<compile_context>
chip_gen: v5e
topology: v5e:2x2
jax: 0.10.0
libtpu: 0.0.40
codegen_flags: <defaults>
</compile_context>

<pallas_src>
import functools

import jax
import jax.numpy as jnp
from jax.experimental import pallas as pl
from jax.experimental.pallas import tpu as pltpu

BN_EPS = 1e-5
LANE = 128
VMEM_LIMIT = 48 * 1024 * 1024        # headroom under v7x's 64 MiB/TC
X_RESIDENT_BYTES = 12 * 1024 * 1024  # keep x fully VMEM-resident below this


def _round_up(x, m):
    return ((x + m - 1) // m) * m


def _choose_node_tiling(n):
    """Node padding + (row tile, K tile); collapse K when A slab fits VMEM."""
    n_pad = _round_up(n, LANE)
    tm = 1024 if n_pad >= 4096 else min(512, n_pad)
    n_pad = _round_up(n_pad, tm)
    # Collapse the K axis entirely when the double-buffered bf16 A row-slab
    # stays well inside VMEM (single dot per row tile, fewer grid steps).
    tk = n_pad if (2 * 2 * tm * n_pad) <= (16 << 20) else tm
    return n_pad, tm, tk


# ---------------------------------------------------------------------------
# Kernel 1: tiled GIN aggregation (self term folded into A) + MLP + ReLU
#           + partial BatchNorm statistics
# ---------------------------------------------------------------------------
def _gin_matmul_kernel(a_ref, x_ref, w1_ref, b1_ref, w2_ref, b2_ref,
                       z_ref, psum_ref, psq_ref, acc_ref,
                       *, n_valid, tm, tk, x_resident):
    # Hoist grid queries out of pl.when bodies (compile fix).
    i = pl.program_id(0)
    k = pl.program_id(1)
    is_first = k == 0
    is_last = k == pl.num_programs(1) - 1
    row0 = i * tm

    @pl.when(is_first)
    def _():
        acc_ref[...] = jnp.zeros_like(acc_ref)

    # A already carries the GIN self term ((1+eps)*I on real-node rows), so a
    # single MXU dot per K slab is the full aggregation (bf16 in, f32 acc).
    if x_resident:
        xk = x_ref[pl.ds(k * tk, tk), :]
    else:
        xk = x_ref[...]
    acc_ref[...] += jnp.dot(a_ref[...], xk, preferred_element_type=jnp.float32)

    @pl.when(is_last)
    def _():
        h = acc_ref[...]
        # MLP: Linear -> ReLU -> Linear (bf16 MXU operands, f32 accumulate).
        h1 = jnp.dot(h.astype(jnp.bfloat16), w1_ref[...],
                     preferred_element_type=jnp.float32) + b1_ref[...]
        h1 = jnp.maximum(h1, 0.0)
        h2 = jnp.dot(h1.astype(jnp.bfloat16), w2_ref[...],
                     preferred_element_type=jnp.float32) + b2_ref[...]
        z = jnp.maximum(h2, 0.0)            # F.relu after the conv

        # Mask padded node rows to exact zero (guards BN stats, pooling and
        # downstream layers).
        rows = jax.lax.broadcasted_iota(jnp.int32, (tm, 1), 0) + row0
        zv = z * (rows < n_valid).astype(jnp.float32)

        psum_ref[...] = jnp.sum(zv, axis=0, keepdims=True).reshape(1, 1, -1)
        psq_ref[...] = jnp.sum(zv * zv, axis=0, keepdims=True).reshape(1, 1, -1)
        z_ref[...] = zv.astype(z_ref.dtype)


def _gin_matmul(adj, x, w1, b1, w2, b2, *, n_valid, tm, tk):
    n_pad = adj.shape[0]
    f_in = x.shape[1]
    h_pad = w1.shape[1]
    rt, kt = n_pad // tm, n_pad // tk

    x_resident = (n_pad * f_in * 2) <= X_RESIDENT_BYTES
    if x_resident:
        # Full x stays VMEM-resident (constant block index -> fetched once).
        x_spec = pl.BlockSpec((n_pad, f_in), lambda i, k: (0, 0))
    else:
        x_spec = pl.BlockSpec((tk, f_in), lambda i, k: (k, 0))

    kernel = functools.partial(_gin_matmul_kernel, n_valid=n_valid, tm=tm,
                               tk=tk, x_resident=x_resident)
    return pl.pallas_call(
        kernel,
        out_shape=(
            jax.ShapeDtypeStruct((n_pad, h_pad), jnp.bfloat16),   # pre-BN z
            jax.ShapeDtypeStruct((rt, 1, h_pad), jnp.float32),    # partial sum
            jax.ShapeDtypeStruct((rt, 1, h_pad), jnp.float32),    # partial sum sq
        ),
        grid_spec=pltpu.PrefetchScalarGridSpec(
            num_scalar_prefetch=0,
            grid=(rt, kt),
            in_specs=[
                pl.BlockSpec((tm, tk), lambda i, k: (i, k)),        # A tile
                x_spec,                                             # x
                pl.BlockSpec((f_in, h_pad), lambda i, k: (0, 0)),   # W1
                pl.BlockSpec((1, h_pad), lambda i, k: (0, 0)),      # b1
                pl.BlockSpec((h_pad, h_pad), lambda i, k: (0, 0)),  # W2
                pl.BlockSpec((1, h_pad), lambda i, k: (0, 0)),      # b2
            ],
            out_specs=[
                pl.BlockSpec((tm, h_pad), lambda i, k: (i, 0)),
                pl.BlockSpec((1, 1, h_pad), lambda i, k: (i, 0, 0)),
                pl.BlockSpec((1, 1, h_pad), lambda i, k: (i, 0, 0)),
            ],
            scratch_shapes=[pltpu.VMEM((tm, f_in), jnp.float32)],
        ),
        compiler_params=pltpu.CompilerParams(
            dimension_semantics=("parallel", "arbitrary"),
            vmem_limit_bytes=VMEM_LIMIT),
    )(adj, x, w1, b1, w2, b2)


# ---------------------------------------------------------------------------
# Kernel 2: BatchNorm affine apply + per-row-tile partial global_add_pool
#           (grid axis fully parallel; partials reduced outside)
# ---------------------------------------------------------------------------
def _bn_pool_kernel(z_ref, alpha_ref, shift_ref, p_ref, zo_ref, g_ref):
    zb = z_ref[...].astype(jnp.float32) * alpha_ref[...] + shift_ref[...]
    zb16 = zb.astype(jnp.bfloat16)
    zo_ref[...] = zb16
    # Partial pooled sum for this row tile (P entries are exact 0/1 in bf16;
    # padded node columns of P are zero, so padded rows contribute nothing).
    g_ref[...] = jnp.dot(p_ref[...], zb16,
                         preferred_element_type=jnp.float32)[None]


def _bn_pool(z_pre, alpha, shift, pool_mat, *, tm):
    n_pad, h_pad = z_pre.shape
    rt = n_pad // tm
    nb_pad = pool_mat.shape[0]
    return pl.pallas_call(
        _bn_pool_kernel,
        out_shape=(
            jax.ShapeDtypeStruct((n_pad, h_pad), jnp.bfloat16),      # post-BN z
            jax.ShapeDtypeStruct((rt, nb_pad, h_pad), jnp.float32),  # partial g
        ),
        grid_spec=pltpu.PrefetchScalarGridSpec(
            num_scalar_prefetch=0,
            grid=(rt,),
            in_specs=[
                pl.BlockSpec((tm, h_pad), lambda i: (i, 0)),
                pl.BlockSpec((1, h_pad), lambda i: (0, 0)),
                pl.BlockSpec((1, h_pad), lambda i: (0, 0)),
                pl.BlockSpec((nb_pad, tm), lambda i: (0, i)),
            ],
            out_specs=[
                pl.BlockSpec((tm, h_pad), lambda i: (i, 0)),
                pl.BlockSpec((1, nb_pad, h_pad), lambda i: (i, 0, 0)),
            ],
        ),
        compiler_params=pltpu.CompilerParams(
            dimension_semantics=("parallel",),
            vmem_limit_bytes=VMEM_LIMIT),
    )(z_pre, alpha, shift, pool_mat)


# ---------------------------------------------------------------------------
# Full forward
# ---------------------------------------------------------------------------
def gconv_forward(x, edge_index, batch, params, *, num_graphs, hidden_dim):
    """GConv.forward: returns (z, g) like the PyTorch module."""
    n, f_in = x.shape
    n_pad, tm, tk = _choose_node_tiling(n)
    f_in_pad = _round_up(f_in, LANE)
    h_pad = _round_up(hidden_dim, LANE)
    nb_pad = _round_up(num_graphs, 8)

    # Dense adjacency A[dst, src] with the GIN self term (default eps = 0)
    # folded in on the real-node diagonal (glue).  Small-integer entries are
    # exact in bf16 and halve the dominant A-tile DMA traffic.
    adj = jnp.zeros((n_pad, n_pad), jnp.float32)
    adj = adj.at[edge_index[1], edge_index[0]].add(1.0)
    diag = jnp.arange(n, dtype=jnp.int32)
    adj = adj.at[diag, diag].add(1.0).astype(jnp.bfloat16)

    # Graph-membership pooling matrix P[graph, node]; padded rows/cols zero.
    pool_mat = (batch[None, :] ==
                jnp.arange(num_graphs, dtype=batch.dtype)[:, None]).astype(jnp.float32)
    pool_mat = jnp.pad(pool_mat, ((0, nb_pad - num_graphs),
                                  (0, n_pad - n))).astype(jnp.bfloat16)

    cur = jnp.pad(x, ((0, n_pad - n), (0, f_in_pad - f_in))).astype(jnp.bfloat16)
    inv_n = 1.0 / float(n)

    zs, gs = [], []
    for li, (w1, b1, w2, b2, gamma, beta) in enumerate(params):
        in_pad = f_in_pad if li == 0 else h_pad
        w1p = jnp.pad(w1, ((0, in_pad - w1.shape[0]),
                           (0, h_pad - w1.shape[1]))).astype(jnp.bfloat16)
        b1p = jnp.pad(b1, ((0, 0), (0, h_pad - b1.shape[1])))
        w2p = jnp.pad(w2, ((0, h_pad - w2.shape[0]),
                           (0, h_pad - w2.shape[1]))).astype(jnp.bfloat16)
        b2p = jnp.pad(b2, ((0, 0), (0, h_pad - b2.shape[1])))
        gammap = jnp.pad(gamma, ((0, 0), (0, h_pad - gamma.shape[1])))
        betap = jnp.pad(beta, ((0, 0), (0, h_pad - beta.shape[1])))

        z_pre, psum, psq = _gin_matmul(adj, cur, w1p, b1p, w2p, b2p,
                                       n_valid=n, tm=tm, tk=tk)

        # Tiny XLA reduction of the per-row-tile partial BN statistics into a
        # per-feature affine (training-mode BatchNorm1d, biased variance).
        mean = jnp.sum(psum, axis=0) * inv_n           # (1, h_pad)
        ex2 = jnp.sum(psq, axis=0) * inv_n
        var = jnp.maximum(ex2 - mean * mean, 0.0)
        inv_std = jax.lax.rsqrt(var + BN_EPS)
        alpha = gammap * inv_std
        shift = betap - mean * alpha

        z_bn, g_part = _bn_pool(z_pre, alpha, shift, pool_mat, tm=tm)
        g = jnp.sum(g_part, axis=0)                    # reduce row-tile partials

        zs.append(z_bn[:n, :hidden_dim].astype(jnp.float32))
        gs.append(g[:num_graphs, :hidden_dim])
        cur = z_bn  # bf16 padded activations feed the next layer directly

    return jnp.concatenate(zs, axis=1), jnp.concatenate(gs, axis=1)


def make_params(key, input_dim, hidden_dim, num_layers):
    params = []
    for i in range(num_layers):
        in_dim = input_dim if i == 0 else hidden_dim
        key, k1, k2, k3, k4 = jax.random.split(key, 5)
        w1 = 0.1 * jax.random.normal(k1, (in_dim, hidden_dim), jnp.float32)
        b1 = 0.1 * jax.random.normal(k2, (1, hidden_dim), jnp.float32)
        w2 = 0.1 * jax.random.normal(k3, (hidden_dim, hidden_dim), jnp.float32)
        b2 = 0.1 * jax.random.normal(k4, (1, hidden_dim), jnp.float32)
        gamma = jnp.ones((1, hidden_dim), jnp.float32)   # BatchNorm weight init
        beta = jnp.zeros((1, hidden_dim), jnp.float32)   # BatchNorm bias init
        params.append((w1, b1, w2, b2, gamma, beta))
    return params


def gconv_reference(x, edge_index, batch, params, num_graphs):
    """Pure-JAX f32 reference of the PyTorch forward (for validation)."""
    n = x.shape[0]
    adj = jnp.zeros((n, n), jnp.float32).at[edge_index[1], edge_index[0]].add(1.0)
    pool = (batch[None, :] ==
            jnp.arange(num_graphs, dtype=batch.dtype)[:, None]).astype(jnp.float32)
    z = x
    zs = []
    for (w1, b1, w2, b2, gamma, beta) in params:
        h = adj @ z + z
        h1 = jnp.maximum(h @ w1 + b1, 0.0)
        h2 = h1 @ w2 + b2
        zr = jnp.maximum(h2, 0.0)
        mean = zr.mean(axis=0, keepdims=True)
        var = ((zr - mean) ** 2).mean(axis=0, keepdims=True)
        z = (zr - mean) * jax.lax.rsqrt(var + BN_EPS) * gamma + beta
        zs.append(z)
    z_cat = jnp.concatenate(zs, axis=1)
    g_cat = pool @ z_cat
    return z_cat, g_cat


if __name__ == "__main__":
    key = jax.random.PRNGKey(0)

    # Small synthetic graph batch: 2 graphs, 8 nodes each, bidirectional rings.
    num_graphs, nodes_per_graph = 2, 8
    N = num_graphs * nodes_per_graph          # 16 nodes
    input_dim, hidden_dim, num_layers = 4, 32, 2

    src, dst = [], []
    for gph in range(num_graphs):
        base = gph * nodes_per_graph
        for i in range(nodes_per_graph):
            j = (i + 1) % nodes_per_graph
            src += [base + i, base + j]
            dst += [base + j, base + i]
    edge_index = jnp.array([src, dst], dtype=jnp.int32)   # [2, 32]
    batch = jnp.repeat(jnp.arange(num_graphs, dtype=jnp.int32), nodes_per_graph)

    key, kx, kp = jax.random.split(key, 3)
    x = jax.random.normal(kx, (N, input_dim), jnp.float32)
    params = make_params(kp, input_dim, hidden_dim, num_layers)

    fwd = jax.jit(functools.partial(gconv_forward, num_graphs=num_graphs,
                                    hidden_dim=hidden_dim))
    z, g = fwd(x, edge_index, batch, params)
    jax.block_until_ready((z, g))

    assert z.shape == (N, hidden_dim * num_layers)
    assert g.shape == (num_graphs, hidden_dim * num_layers)

    # Validate against the pure-JAX f32 reference (bf16 operands => loose tol).
    z_ref, g_ref = gconv_reference(x, edge_index, batch, params, num_graphs)
    rel_z = float(jnp.linalg.norm(z - z_ref) / (jnp.linalg.norm(z_ref) + 1e-6))
    rel_g = float(jnp.linalg.norm(g - g_ref) / (jnp.linalg.norm(g_ref) + 1e-6))
    assert rel_z < 0.1, f"z mismatch: rel err {rel_z:.4f}"
    assert rel_g < 0.1, f"g mismatch: rel err {rel_g:.4f}"

    print("KERNEL_OK")
</pallas_src>

<mosaic_0001>
module attributes {stable_mosaic.version = 11 : i64} {
  func.func @_gin_matmul_kernel(%arg0: i32, %arg1: i32, %arg2: memref<128x128xbf16, #tpu.memory_space<vmem>>, %arg3: memref<128x128xbf16, #tpu.memory_space<vmem>>, %arg4: memref<128x128xbf16, #tpu.memory_space<vmem>>, %arg5: memref<1x128xf32, #tpu.memory_space<vmem>>, %arg6: memref<128x128xbf16, #tpu.memory_space<vmem>>, %arg7: memref<1x128xf32, #tpu.memory_space<vmem>>, %arg8: memref<128x128xbf16, #tpu.memory_space<vmem>>, %arg9: memref<1x1x128xf32, #tpu.memory_space<vmem>>, %arg10: memref<1x1x128xf32, #tpu.memory_space<vmem>>, %arg11: memref<128x128xf32, #tpu.memory_space<vmem>>) attributes {dimension_semantics = [#tpu.dimension_semantics<parallel>, #tpu.dimension_semantics<arbitrary>], iteration_bounds = array<i64: 1, 1>, scalar_prefetch = 0 : i64, scratch_operands = 1 : i64, tpu.core_type = #tpu.core_type<tc>, window_params = [{transform_indices = @transform_0, window_bounds = array<i64: 128, 128>}, {pipeline_mode = #tpu.pipeline_mode<synchronous>, transform_indices = @transform_1, window_bounds = array<i64: 128, 128>}, {pipeline_mode = #tpu.pipeline_mode<synchronous>, transform_indices = @transform_2, window_bounds = array<i64: 128, 128>}, {pipeline_mode = #tpu.pipeline_mode<synchronous>, transform_indices = @transform_3, window_bounds = array<i64: 1, 128>}, {pipeline_mode = #tpu.pipeline_mode<synchronous>, transform_indices = @transform_4, window_bounds = array<i64: 128, 128>}, {pipeline_mode = #tpu.pipeline_mode<synchronous>, transform_indices = @transform_5, window_bounds = array<i64: 1, 128>}, {transform_indices = @transform_6, window_bounds = array<i64: 128, 128>}, {transform_indices = @transform_7, window_bounds = array<i64: 1, 1, 128>}, {transform_indices = @transform_8, window_bounds = array<i64: 1, 1, 128>}]} {
    %c0_i32 = arith.constant 0 : i32
    %0 = arith.cmpi eq, %arg1, %c0_i32 : i32
    %c0_i32_0 = arith.constant 0 : i32
    %1 = arith.cmpi eq, %arg1, %c0_i32_0 : i32
    %c128_i32 = arith.constant 128 : i32
    %2 = arith.muli %arg0, %c128_i32 : i32
    %3 = arith.extui %0 : i1 to i32
    %c0_i32_1 = arith.constant 0 : i32
    %4 = arith.cmpi ne, %3, %c0_i32_1 : i32
    scf.if %4 {
      %cst_10 = arith.constant 0.000000e+00 : f32
      %15 = vector.broadcast %cst_10 : f32 to vector<128x128xf32>
      %c0_11 = arith.constant 0 : index
      %c0_12 = arith.constant 0 : index
      %16 = vector.load %arg11[%c0_11, %c0_12] : memref<128x128xf32, #tpu.memory_space<vmem>>, vector<128x128xf32>
      tpu.vector_store %arg11[%c0_11, %c0_12], %15 {strides = array<i32>} : memref<128x128xf32, #tpu.memory_space<vmem>>, vector<128x128xf32>,
    } else {
    }
    %c128_i32_2 = arith.constant 128 : i32
    %5 = arith.muli %arg1, %c128_i32_2 : i32
    %6 = arith.index_cast %5 : i32 to index
    %c0 = arith.constant 0 : index
    %7 = vector.load %arg3[%6, %c0] : memref<128x128xbf16, #tpu.memory_space<vmem>>, vector<128x128xbf16>
    %c0_3 = arith.constant 0 : index
    %c0_4 = arith.constant 0 : index
    %8 = vector.load %arg11[%c0_3, %c0_4] : memref<128x128xf32, #tpu.memory_space<vmem>>, vector<128x128xf32>
    %c0_5 = arith.constant 0 : index
    %c0_6 = arith.constant 0 : index
    %9 = vector.load %arg2[%c0_5, %c0_6] : memref<128x128xbf16, #tpu.memory_space<vmem>>, vector<128x128xbf16>
    %cst = arith.constant dense<0.000000e+00> : vector<128x128xf32>
    %10 = tpu.matmul %9, %7, %cst {dimension_numbers = #tpu.dot_dimension_numbers<[1], [0], [0], [1], [0, 0, 1, 1], [], []>} : vector<128x128xbf16>, vector<128x128xbf16>, vector<128x128xf32> -> vector<128x128xf32>
    %11 = arith.addf %8, %10 : vector<128x128xf32>
    %c0_7 = arith.constant 0 : index
    %c0_8 = arith.constant 0 : index
    %12 = vector.load %arg11[%c0_7, %c0_8] : memref<128x128xf32, #tpu.memory_space<vmem>>, vector<128x128xf32>
    tpu.vector_store %arg11[%c0_7, %c0_8], %11 {strides = array<i32>} : memref<128x128xf32, #tpu.memory_space<vmem>>, vector<128x128xf32>,
    %13 = arith.extui %1 : i1 to i32
    %c0_i32_9 = arith.constant 0 : i32
    %14 = arith.cmpi ne, %13, %c0_i32_9 : i32
    scf.if %14 {
      %c0_10 = arith.constant 0 : index
      %c0_11 = arith.constant 0 : index
      %15 = vector.load %arg11[%c0_10, %c0_11] : memref<128x128xf32, #tpu.memory_space<vmem>>, vector<128x128xf32>
      %16 = arith.truncf %15 : vector<128x128xf32> to vector<128x128xbf16>
      %c0_12 = arith.constant 0 : index
      %c0_13 = arith.constant 0 : index
      %17 = vector.load %arg4[%c0_12, %c0_13] : memref<128x128xbf16, #tpu.memory_space<vmem>>, vector<128x128xbf16>
      %cst_14 = arith.constant dense<0.000000e+00> : vector<128x128xf32>
      %18 = tpu.matmul %16, %17, %cst_14 {dimension_numbers = #tpu.dot_dimension_numbers<[1], [0], [0], [1], [0, 0, 1, 1], [], []>} : vector<128x128xbf16>, vector<128x128xbf16>, vector<128x128xf32> -> vector<128x128xf32>
      %c0_15 = arith.constant 0 : index
      %c0_16 = arith.constant 0 : index
      %19 = vector.load %arg5[%c0_15, %c0_16] : memref<1x128xf32, #tpu.memory_space<vmem>>, vector<1x128xf32>
      %20 = vector.broadcast %19 : vector<1x128xf32> to vector<128x128xf32>
      %21 = arith.addf %18, %20 : vector<128x128xf32>
      %cst_17 = arith.constant 0.000000e+00 : f32
      %22 = vector.broadcast %cst_17 : f32 to vector<128x128xf32>
      %23 = arith.maximumf %21, %22 : vector<128x128xf32>
      %24 = arith.truncf %23 : vector<128x128xf32> to vector<128x128xbf16>
      %c0_18 = arith.constant 0 : index
      %c0_19 = arith.constant 0 : index
      %25 = vector.load %arg6[%c0_18, %c0_19] : memref<128x128xbf16, #tpu.memory_space<vmem>>, vector<128x128xbf16>
      %cst_20 = arith.constant dense<0.000000e+00> : vector<128x128xf32>
      %26 = tpu.matmul %24, %25, %cst_20 {dimension_numbers = #tpu.dot_dimension_numbers<[1], [0], [0], [1], [0, 0, 1, 1], [], []>} : vector<128x128xbf16>, vector<128x128xbf16>, vector<128x128xf32> -> vector<128x128xf32>
      %c0_21 = arith.constant 0 : index
      %c0_22 = arith.constant 0 : index
      %27 = vector.load %arg7[%c0_21, %c0_22] : memref<1x128xf32, #tpu.memory_space<vmem>>, vector<1x128xf32>
      %28 = vector.broadcast %27 : vector<1x128xf32> to vector<128x128xf32>
      %29 = arith.addf %26, %28 : vector<128x128xf32>
      %cst_23 = arith.constant 0.000000e+00 : f32
      %30 = vector.broadcast %cst_23 : f32 to vector<128x128xf32>
      %31 = arith.maximumf %29, %30 : vector<128x128xf32>
      %32 = tpu.iota {dimensions = array<i32: 0>} : vector<128x1xi32>
      %33 = vector.broadcast %2 : i32 to vector<128x1xi32>
      %34 = arith.addi %32, %33 : vector<128x1xi32>
      %c16_i32 = arith.constant 16 : i32
      %35 = vector.broadcast %c16_i32 : i32 to vector<128x1xi32>
      %36 = arith.cmpi slt, %34, %35 : vector<128x1xi32>
      %37 = arith.extui %36 : vector<128x1xi1> to vector<128x1xi32>
      %38 = arith.sitofp %37 : vector<128x1xi32> to vector<128x1xf32>
      %39 = vector.broadcast %38 : vector<128x1xf32> to vector<128x128xf32>
      %40 = arith.mulf %31, %39 : vector<128x128xf32>
      %cst_24 = arith.constant dense<0.000000e+00> : vector<128xf32>
      %41 = vector.multi_reduction <add>, %40, %cst_24 [0] : vector<128x128xf32> to vector<128xf32>
      %42 = vector.shape_cast %41 : vector<128xf32> to vector<1x128xf32>
      %43 = vector.shape_cast %42 : vector<1x128xf32> to vector<1x1x128xf32>
      %c0_25 = arith.constant 0 : index
      %c0_26 = arith.constant 0 : index
      %c0_27 = arith.constant 0 : index
      %44 = vector.load %arg9[%c0_25, %c0_26, %c0_27] : memref<1x1x128xf32, #tpu.memory_space<vmem>>, vector<1x1x128xf32>
      tpu.vector_store %arg9[%c0_25, %c0_26, %c0_27], %43 {strides = array<i32>} : memref<1x1x128xf32, #tpu.memory_space<vmem>>, vector<1x1x128xf32>,
      %45 = arith.mulf %40, %40 : vector<128x128xf32>
      %cst_28 = arith.constant dense<0.000000e+00> : vector<128xf32>
      %46 = vector.multi_reduction <add>, %45, %cst_28 [0] : vector<128x128xf32> to vector<128xf32>
      %47 = vector.shape_cast %46 : vector<128xf32> to vector<1x128xf32>
      %48 = vector.shape_cast %47 : vector<1x128xf32> to vector<1x1x128xf32>
      %c0_29 = arith.constant 0 : index
      %c0_30 = arith.constant 0 : index
      %c0_31 = arith.constant 0 : index
      %49 = vector.load %arg10[%c0_29, %c0_30, %c0_31] : memref<1x1x128xf32, #tpu.memory_space<vmem>>, vector<1x1x128xf32>
      tpu.vector_store %arg10[%c0_29, %c0_30, %c0_31], %48 {strides = array<i32>} : memref<1x1x128xf32, #tpu.memory_space<vmem>>, vector<1x1x128xf32>,
      %50 = arith.truncf %40 : vector<128x128xf32> to vector<128x128xbf16>
      %c0_32 = arith.constant 0 : index
      %c0_33 = arith.constant 0 : index
      %51 = vector.load %arg8[%c0_32, %c0_33] : memref<128x128xbf16, #tpu.memory_space<vmem>>, vector<128x128xbf16>
      tpu.vector_store %arg8[%c0_32, %c0_33], %50 {strides = array<i32>} : memref<128x128xbf16, #tpu.memory_space<vmem>>, vector<128x128xbf16>,
    } else {
    }
    return
  }
  func.func @transform_0(%arg0: i32, %arg1: i32) -> (i32, i32) {
    %c0_i32 = arith.constant 0 : i32
    return %arg0, %arg1 : i32, i32
  }
  func.func @transform_1(%arg0: i32, %arg1: i32) -> (i32, i32) {
    %c0_i32 = arith.constant 0 : i32
    %c0_i32_0 = arith.constant 0 : i32
    %c0_i32_1 = arith.constant 0 : i32
    return %c0_i32, %c0_i32_0 : i32, i32
  }
  func.func @transform_2(%arg0: i32, %arg1: i32) -> (i32, i32) {
    %c0_i32 = arith.constant 0 : i32
    %c0_i32_0 = arith.constant 0 : i32
    %c0_i32_1 = arith.constant 0 : i32
    return %c0_i32, %c0_i32_0 : i32, i32
  }
  func.func @transform_3(%arg0: i32, %arg1: i32) -> (i32, i32) {
    %c0_i32 = arith.constant 0 : i32
    %c0_i32_0 = arith.constant 0 : i32
    %c0_i32_1 = arith.constant 0 : i32
    return %c0_i32, %c0_i32_0 : i32, i32
  }
  func.func @transform_4(%arg0: i32, %arg1: i32) -> (i32, i32) {
    %c0_i32 = arith.constant 0 : i32
    %c0_i32_0 = arith.constant 0 : i32
    %c0_i32_1 = arith.constant 0 : i32
    return %c0_i32, %c0_i32_0 : i32, i32
  }
  func.func @transform_5(%arg0: i32, %arg1: i32) -> (i32, i32) {
    %c0_i32 = arith.constant 0 : i32
    %c0_i32_0 = arith.constant 0 : i32
    %c0_i32_1 = arith.constant 0 : i32
    return %c0_i32, %c0_i32_0 : i32, i32
  }
  func.func @transform_6(%arg0: i32, %arg1: i32) -> (i32, i32) {
    %c0_i32 = arith.constant 0 : i32
    %c0_i32_0 = arith.constant 0 : i32
    return %arg0, %c0_i32 : i32, i32
  }
  func.func @transform_7(%arg0: i32, %arg1: i32) -> (i32, i32, i32) {
    %c0_i32 = arith.constant 0 : i32
    %c0_i32_0 = arith.constant 0 : i32
    %c0_i32_1 = arith.constant 0 : i32
    return %arg0, %c0_i32, %c0_i32_0 : i32, i32, i32
  }
  func.func @transform_8(%arg0: i32, %arg1: i32) -> (i32, i32, i32) {
    %c0_i32 = arith.constant 0 : i32
    %c0_i32_0 = arith.constant 0 : i32
    %c0_i32_1 = arith.constant 0 : i32
    return %arg0, %c0_i32, %c0_i32_0 : i32, i32, i32
  }
}

module attributes {stable_mosaic.version = 11 : i64} {
  func.func @_bn_pool_kernel(%arg0: i32, %arg1: memref<128x128xbf16, #tpu.memory_space<vmem>>, %arg2: memref<1x128xf32, #tpu.memory_space<vmem>>, %arg3: memref<1x128xf32, #tpu.memory_space<vmem>>, %arg4: memref<8x128xbf16, #tpu.memory_space<vmem>>, %arg5: memref<128x128xbf16, #tpu.memory_space<vmem>>, %arg6: memref<1x8x128xf32, #tpu.memory_space<vmem>>) attributes {dimension_semantics = [#tpu.dimension_semantics<parallel>], iteration_bounds = array<i64: 1>, scalar_prefetch = 0 : i64, scratch_operands = 0 : i64, tpu.core_type = #tpu.core_type<tc>, window_params = [{transform_indices = @transform_0, window_bounds = array<i64: 128, 128>}, {pipeline_mode = #tpu.pipeline_mode<synchronous>, transform_indices = @transform_1, window_bounds = array<i64: 1, 128>}, {pipeline_mode = #tpu.pipeline_mode<synchronous>, transform_indices = @transform_2, window_bounds = array<i64: 1, 128>}, {transform_indices = @transform_3, window_bounds = array<i64: 8, 128>}, {transform_indices = @transform_4, window_bounds = array<i64: 128, 128>}, {transform_indices = @transform_5, window_bounds = array<i64: 1, 8, 128>}]} {
    %c0 = arith.constant 0 : index
    %c0_0 = arith.constant 0 : index
    %0 = vector.load %arg1[%c0, %c0_0] : memref<128x128xbf16, #tpu.memory_space<vmem>>, vector<128x128xbf16>
    %1 = arith.extf %0 : vector<128x128xbf16> to vector<128x128xf32>
    %c0_1 = arith.constant 0 : index
    %c0_2 = arith.constant 0 : index
    %2 = vector.load %arg2[%c0_1, %c0_2] : memref<1x128xf32, #tpu.memory_space<vmem>>, vector<1x128xf32>
    %3 = vector.broadcast %2 : vector<1x128xf32> to vector<128x128xf32>
    %4 = arith.mulf %1, %3 : vector<128x128xf32>
    %c0_3 = arith.constant 0 : index
    %c0_4 = arith.constant 0 : index
    %5 = vector.load %arg3[%c0_3, %c0_4] : memref<1x128xf32, #tpu.memory_space<vmem>>, vector<1x128xf32>
    %6 = vector.broadcast %5 : vector<1x128xf32> to vector<128x128xf32>
    %7 = arith.addf %4, %6 : vector<128x128xf32>
    %8 = arith.truncf %7 : vector<128x128xf32> to vector<128x128xbf16>
    %c0_5 = arith.constant 0 : index
    %c0_6 = arith.constant 0 : index
    %9 = vector.load %arg5[%c0_5, %c0_6] : memref<128x128xbf16, #tpu.memory_space<vmem>>, vector<128x128xbf16>
    tpu.vector_store %arg5[%c0_5, %c0_6], %8 {strides = array<i32>} : memref<128x128xbf16, #tpu.memory_space<vmem>>, vector<128x128xbf16>,
    %c0_7 = arith.constant 0 : index
    %c0_8 = arith.constant 0 : index
    %10 = vector.load %arg4[%c0_7, %c0_8] : memref<8x128xbf16, #tpu.memory_space<vmem>>, vector<8x128xbf16>
    %cst = arith.constant dense<0.000000e+00> : vector<8x128xf32>
    %11 = tpu.matmul %10, %8, %cst {dimension_numbers = #tpu.dot_dimension_numbers<[1], [0], [0], [1], [0, 0, 1, 1], [], []>} : vector<8x128xbf16>, vector<128x128xbf16>, vector<8x128xf32> -> vector<8x128xf32>
    %12 = vector.shape_cast %11 : vector<8x128xf32> to vector<1x8x128xf32>
    %c0_9 = arith.constant 0 : index
    %c0_10 = arith.constant 0 : index
    %c0_11 = arith.constant 0 : index
    %13 = vector.load %arg6[%c0_9, %c0_10, %c0_11] : memref<1x8x128xf32, #tpu.memory_space<vmem>>, vector<1x8x128xf32>
    tpu.vector_store %arg6[%c0_9, %c0_10, %c0_11], %12 {strides = array<i32>} : memref<1x8x128xf32, #tpu.memory_space<vmem>>, vector<1x8x128xf32>,
    return
  }
  func.func @transform_0(%arg0: i32) -> (i32, i32) {
    %c0_i32 = arith.constant 0 : i32
    %c0_i32_0 = arith.constant 0 : i32
    return %arg0, %c0_i32 : i32, i32
  }
  func.func @transform_1(%arg0: i32) -> (i32, i32) {
    %c0_i32 = arith.constant 0 : i32
    %c0_i32_0 = arith.constant 0 : i32
    %c0_i32_1 = arith.constant 0 : i32
    return %c0_i32, %c0_i32_0 : i32, i32
  }
  func.func @transform_2(%arg0: i32) -> (i32, i32) {
    %c0_i32 = arith.constant 0 : i32
    %c0_i32_0 = arith.constant 0 : i32
    %c0_i32_1 = arith.constant 0 : i32
    return %c0_i32, %c0_i32_0 : i32, i32
  }
  func.func @transform_3(%arg0: i32) -> (i32, i32) {
    %c0_i32 = arith.constant 0 : i32
    %c0_i32_0 = arith.constant 0 : i32
    return %c0_i32, %arg0 : i32, i32
  }
  func.func @transform_4(%arg0: i32) -> (i32, i32) {
    %c0_i32 = arith.constant 0 : i32
    %c0_i32_0 = arith.constant 0 : i32
    return %arg0, %c0_i32 : i32, i32
  }
  func.func @transform_5(%arg0: i32) -> (i32, i32, i32) {
    %c0_i32 = arith.constant 0 : i32
    %c0_i32_0 = arith.constant 0 : i32
    %c0_i32_1 = arith.constant 0 : i32
    return %arg0, %c0_i32, %c0_i32_0 : i32, i32, i32
  }
}

</mosaic_0001>

<bundles_post_ra>
// kernel: gconv_forward.5
= control target key start
LH: loop header
LB: loop body
LE: loop exit
PB: predicated region body
PF: predicated region fallthrough
CT: control target
= control target key end

     0   :  { %s408_s0 = inlined_call_operand.vmem [shape: bf16[128,128], index: 0, kind: input, shape index: {}]   ;;  %s409_s1 = inlined_call_operand.vmem [shape: f32[1,128], index: 1, kind: input, shape index: {}]   ;;  %s410_s2 = inlined_call_operand.vmem [shape: f32[1,128], index: 2, kind: input, shape index: {}]   ;;  %s411_s4 = inlined_call_operand.vmem [shape: bf16[128,128], index: 4, kind: output, shape index: {0}]   ;;  %s412_s3 = inlined_call_operand.vmem [shape: bf16[8,128], index: 3, kind: input, shape index: {}]   ;;  %s413_s5 = inlined_call_operand.vmem [shape: f32[1,8,128], index: 5, kind: output, shape index: {1}]  }
   0x1   :  { %v272_v0 = vld [vmem:[%s408_s0 + $0x38] sm:$0xff]   ;;  %v318_v1 = vld [vmem:[%s409_s1] ss:$0 sm:$0xff]  ;;  %v271_v5 = vld [vmem:[%s408_s0 + $0x30] sm:$0xff]  }
   0x2   :  { %v224_v2 = vunpack.c.l.bf16 %v272_v0  ;;  %v225_v3 = vunpack.c.h.bf16 %v272_v0  ;;  %v323_v4 = vld [vmem:[%s410_s2] ss:$0 sm:$0xff]  ;;  %v220_v6 = vunpack.c.l.bf16 %v271_v5  ;;  %v221_v7 = vunpack.c.h.bf16 %v271_v5  ;;  %v270_v8 = vld [vmem:[%s408_s0 + $0x28] sm:$0xff]   ;;  %v268_v38 = vld [vmem:[%s408_s0 + $0x18] sm:$0xff]  }
   0x3   :  { %v269_v9 = vld [vmem:[%s408_s0 + $0x20] sm:$0xff]   ;;  %v216_v12 = vunpack.c.l.bf16 %v270_v8  ;;  %v217_v13 = vunpack.c.h.bf16 %v270_v8  ;;  %v267_v43 = vld [vmem:[%s408_s0 + $0x10] sm:$0xff]   ;;  %v208_v49 = vunpack.c.l.bf16 %v268_v38  ;;  %v209_v50 = vunpack.c.h.bf16 %v268_v38  ;;  %v266_v51 = vld [vmem:[%s408_s0 + $0x8] sm:$0xff]  }
   0x4   :  { %v69_v10 = vmul.f32 %v318_v1, %v224_v2  ;;  %v70_v11 = vmul.f32 %v318_v1, %v225_v3  ;;  %v67_v14 = vmul.f32 %v318_v1, %v220_v6  ;;  %v68_v15 = vmul.f32 %v318_v1, %v221_v7  ;;  %v195_v60 = vld [vmem:[%s408_s0] sm:$0xff]  }
   0x5   :  { %v212_v16 = vunpack.c.l.bf16 %v269_v9  ;;  %v213_v17 = vunpack.c.h.bf16 %v269_v9  ;;  %v65_v20 = vmul.f32 %v318_v1, %v216_v12  ;;  %v66_v21 = vmul.f32 %v318_v1, %v217_v13 }
   0x6   :  { %v89_v18 = vadd.f32 %v323_v4, %v69_v10  ;;  %v90_v19 = vadd.f32 %v323_v4, %v70_v11  ;;  %v87_v22 = vadd.f32 %v323_v4, %v67_v14  ;;  %v88_v23 = vadd.f32 %v323_v4, %v68_v15 }
   0x7   :  { %v63_v24 = vmul.f32 %v318_v1, %v212_v16  ;;  %v64_v25 = vmul.f32 %v318_v1, %v213_v17  ;;  %v85_v29 = vadd.f32 %v323_v4, %v65_v20  ;;  %v86_v33 = vadd.f32 %v323_v4, %v66_v21 }
   0x8   :  { %v105_v26 = vpack.c.bf16 %v89_v18, %v89_v18  ;;  %v106_v27 = vpack.c.bf16 %v90_v19, %v90_v19  ;;  %v264_v28 = vpack.c.bf16 %v90_v19, %v89_v18  ;;  %v103_v30 = vpack.c.bf16 %v87_v22, %v87_v22 }
   0x9   :  { %v104_v31 = vpack.c.bf16 %v88_v23, %v88_v23  ;;  %v259_v32 = vpack.c.bf16 %v88_v23, %v87_v22  ;;  %v101_v36 = vpack.c.bf16 %v85_v29, %v85_v29  ;;  %v83_v37 = vadd.f32 %v323_v4, %v63_v24 }
   0xa   :  { %279 = vst [vmem:[%s411_s4 + $0x38] sm:$0xff] %v264_v28   ;;  %v154_v34 = vunpack.c.l.b16 %v105_v26  ;;  %v155_v35 = vunpack.c.l.b16 %v106_v27  ;;  %v152_v39 = vunpack.c.l.b16 %v103_v30  ;;  %v102_v41 = vpack.c.bf16 %v86_v33, %v86_v33 }
   0xb   :  { %278 = vst [vmem:[%s411_s4 + $0x30] sm:$0xff] %v259_v32   ;;  %v153_v40 = vunpack.c.l.b16 %v104_v31  ;;  %v254_v42 = vpack.c.bf16 %v86_v33, %v85_v29  ;;  %v150_v45 = vunpack.c.l.b16 %v101_v36  ;;  %v84_v46 = vadd.f32 %v323_v4, %v64_v25 }
   0xc   :  { %v163_v44 = vpack.c.b16 %v155_v35, %v154_v34  ;;  %v99_v47 = vpack.c.bf16 %v83_v37, %v83_v37  ;;  %v151_v48 = vunpack.c.l.b16 %v102_v41  ;;  %v204_v55 = vunpack.c.l.bf16 %v267_v43 }
   0xd   :  { %277 = vst [vmem:[%s411_s4 + $0x28] sm:$0xff] %v254_v42   ;;  %v162_v52 = vpack.c.b16 %v153_v40, %v152_v39  ;;  %v100_v53 = vpack.c.bf16 %v84_v46, %v84_v46  ;;  %v249_v54 = vpack.c.bf16 %v84_v46, %v83_v37  ;;  %v61_v57 = vmul.f32 %v318_v1, %v208_v49  ;;  %v123_v42 = vld [vmem:[%s412_s3] sm:$0xf] }
   0xe   :  { %172 = vmatpush.bf16.msra.mxu0 %v163_v44  ;;  %v148_v56 = vunpack.c.l.b16 %v99_v47  ;;  %v62_v58 = vmul.f32 %v318_v1, %v209_v50  ;;  %v205_v59 = vunpack.c.h.bf16 %v267_v43  ;;  %v161_v61 = vpack.c.b16 %v151_v48, %v150_v45 }
   0xf   :  { %276 = vst [vmem:[%s411_s4 + $0x20] sm:$0xff] %v249_v54   ;;  %v59_v62 = vmul.f32 %v318_v1, %v204_v55  ;;  %v200_v63 = vunpack.c.l.bf16 %v266_v51  ;;  %v201_v0 = vunpack.c.h.bf16 %v266_v51  ;;  %v149_v2 = vunpack.c.l.b16 %v100_v53 }
  0x10   :  { %v81_v3 = vadd.f32 %v323_v4, %v61_v57  ;;  %v82_v5 = vadd.f32 %v323_v4, %v62_v58  ;;  %v60_v6 = vmul.f32 %v318_v1, %v205_v59  ;;  %v196_v10 = vunpack.c.l.bf16 %v195_v60 }
  0x11   :  { %v79_v7 = vadd.f32 %v323_v4, %v59_v62  ;;  %v57_v8 = vmul.f32 %v318_v1, %v200_v63  ;;  %v58_v9 = vmul.f32 %v318_v1, %v201_v0  ;;  %v197_v17 = vunpack.c.h.bf16 %v195_v60 }
  0x12   :  { %173 = vmatpush.bf16.msra.mxu0 %v162_v52  ;;  %v97_v11 = vpack.c.bf16 %v81_v3, %v81_v3  ;;  %v98_v12 = vpack.c.bf16 %v82_v5, %v82_v5  ;;  %v244_v13 = vpack.c.bf16 %v82_v5, %v81_v3  ;;  %v80_v14 = vadd.f32 %v323_v4, %v60_v6 }
  0x13   :  { %v77_v15 = vadd.f32 %v323_v4, %v57_v8  ;;  %v78_v16 = vadd.f32 %v323_v4, %v58_v9  ;;  %v160_v18 = vpack.c.b16 %v149_v2, %v148_v56  ;;  %v95_v19 = vpack.c.bf16 %v79_v7, %v79_v7 }
  0x14   :  { %275 = vst [vmem:[%s411_s4 + $0x18] sm:$0xff] %v244_v13   ;;  %v239_v20 = vpack.c.bf16 %v80_v14, %v79_v7  ;;  %v146_v21 = vunpack.c.l.b16 %v97_v11  ;;  %v147_v22 = vunpack.c.l.b16 %v98_v12  ;;  %v96_v23 = vpack.c.bf16 %v80_v14, %v80_v14 }
  0x15   :  { %v234_v24 = vpack.c.bf16 %v78_v16, %v77_v15  ;;  %v55_v25 = vmul.f32 %v318_v1, %v196_v10  ;;  %v56_v26 = vmul.f32 %v318_v1, %v197_v17  ;;  %v93_v27 = vpack.c.bf16 %v77_v15, %v77_v15 }
  0x16   :  { %174 = vmatpush.bf16.msra.mxu0 %v161_v61  ;;  %274 = vst [vmem:[%s411_s4 + $0x10] sm:$0xff] %v239_v20   ;;  %v159_v30 = vpack.c.b16 %v147_v22, %v146_v21  ;;  %v144_v31 = vunpack.c.l.b16 %v95_v19  ;;  %v145_v32 = vunpack.c.l.b16 %v96_v23  ;;  %v94_v33 = vpack.c.bf16 %v78_v16, %v78_v16 }
  0x17   :  { %273 = vst [vmem:[%s411_s4 + $0x8] sm:$0xff] %v234_v24   ;;  %v75_v28 = vadd.f32 %v323_v4, %v55_v25  ;;  %v76_v29 = vadd.f32 %v323_v4, %v56_v26  ;;  %v142_v35 = vunpack.c.l.b16 %v93_v27 }
  0x18   :  { %v158_v1 = vpack.c.b16 %v145_v32, %v144_v31  ;;  %v143_v36 = vunpack.c.l.b16 %v94_v33 }
  0x19   :  { %v229_v34 = vpack.c.bf16 %v76_v29, %v75_v28  ;;  %v91_v37 = vpack.c.bf16 %v75_v28, %v75_v28  ;;  %v92_v38 = vpack.c.bf16 %v76_v29, %v76_v29 }
  0x1a   :  { %175 = vmatpush.bf16.msra.mxu0 %v160_v18  ;;  %v157_v39 = vpack.c.b16 %v143_v36, %v142_v35 }
  0x1b   :  { %230 = vst [vmem:[%s411_s4] sm:$0xff] %v229_v34   ;;  %v140_v40 = vunpack.c.l.b16 %v91_v37  ;;  %v141_v4 = vunpack.c.l.b16 %v92_v38 }
  0x1d   :  { %v156_v41 = vpack.c.b16 %v141_v4, %v140_v40 }
  0x1e   :  { %176 = vmatpush.bf16.msra.mxu0 %v159_v30 }
  0x22   :  { %177 = vmatpush.bf16.msra.mxu0 %v158_v1 }
  0x26   :  { %178 = vmatpush.bf16.msra.mxu0 %v157_v39 }
  0x2a   :  { %179 = vmatpush.bf16.msra.mxu0 %v156_v41 }
  0x2d   :  { %180 = vmatmul.bf16.vlgmr.msra.gmra.mxu0 %v123_v42 }
  0xaa   :  { %v181_v43 = vpop.f32.mrf.mxu0 }
  0xab   :  { %185 = vst [vmem:[%s413_s5] sm:$0xff] %v181_v43 }
  0xb2   :  { %v183_v44 = vpop.f32.mrf.mxu0 }

// kernel: gconv_forward.4
= control target key start
LH: loop header
LB: loop body
LE: loop exit
PB: predicated region body
PF: predicated region fallthrough
CT: control target
= control target key end

     0   :  { %s1234_s1 = inlined_call_operand.vmem [shape: bf16[128,128], index: 1, kind: input, shape index: {}]   ;;  %s1235_s0 = inlined_call_operand.vmem [shape: bf16[128,128], index: 0, kind: input, shape index: {}]   ;;  %s1236_s2 = inlined_call_operand.vmem [shape: bf16[128,128], index: 2, kind: input, shape index: {}]   ;;  %s1237_s3 = inlined_call_operand.vmem [shape: f32[1,128], index: 3, kind: input, shape index: {}]   ;;  %s1238_s4 = inlined_call_operand.vmem [shape: bf16[128,128], index: 4, kind: input, shape index: {}]   ;;  %s1239_s5 = inlined_call_operand.vmem [shape: f32[1,128], index: 5, kind: input, shape index: {}]   ;;  %s1240_s6 = inlined_call_operand.vmem [shape: bf16[128,128], index: 6, kind: output, shape index: {0}]   ;;  %s1241_s7 = inlined_call_operand.vmem [shape: f32[1,1,128], index: 7, kind: output, shape index: {1}]   ;;  %s1242_s8 = inlined_call_operand.vmem [shape: f32[1,1,128], index: 8, kind: output, shape index: {2}]  }
   0x1   :  { %v917_v0 = vld [vmem:[%s1234_s1 + $0x38] sm:$0xff]  ;;  %v916_v1 = vld [vmem:[%s1234_s1 + $0x30] sm:$0xff]  ;;  %v915_v2 = vld [vmem:[%s1234_s1 + $0x28] sm:$0xff] }
   0x2   :  { %196 = vmatpush.bf16.msra.mxu0 %v917_v0  ;;  %989 = vmatpush.bf16.msra.mxu3 %v917_v0  ;;  %v914_v3 = vld [vmem:[%s1234_s1 + $0x20] sm:$0xff]  ;;  %v913_v4 = vld [vmem:[%s1234_s1 + $0x18] sm:$0xff]  ;;  %v912_v5 = vld [vmem:[%s1234_s1 + $0x10] sm:$0xff] }
   0x3   :  { %v911_v6 = vld [vmem:[%s1234_s1 + $0x8] sm:$0xff]  ;;  %v910_v7 = vld [vmem:[%s1234_s1] sm:$0xff]  ;;  %v924_v9 = vld [vmem:[%s1235_s0 + $0x30] sm:$0xff] }
   0x4   :  { %v918_v8 = vld [vmem:[%s1235_s0] sm:$0xff]  ;;  %v919_v10 = vld [vmem:[%s1235_s0 + $0x8] sm:$0xff]  ;;  %v925_v11 = vld [vmem:[%s1235_s0 + $0x38] sm:$0xff] }
   0x5   :  { %v920_v12 = vld [vmem:[%s1235_s0 + $0x10] sm:$0xff]  ;;  %v921_v13 = vld [vmem:[%s1235_s0 + $0x18] sm:$0xff]  ;;  %v931_v16 = vld [vmem:[%s1236_s2 + $0x28] sm:$0xff] }
   0x6   :  { %197 = vmatpush.bf16.msra.mxu0 %v916_v1  ;;  %990 = vmatpush.bf16.msra.mxu3 %v916_v1  ;;  %v933_v14 = vld [vmem:[%s1236_s2 + $0x38] sm:$0xff]  ;;  %v932_v15 = vld [vmem:[%s1236_s2 + $0x30] sm:$0xff]  ;;  %v930_v17 = vld [vmem:[%s1236_s2 + $0x20] sm:$0xff] }
   0x7   :  { %372 = vmatpush.bf16.msra.mxu1 %v933_v14  ;;  %v922_v18 = vld [vmem:[%s1235_s0 + $0x20] sm:$0xff]  ;;  %v929_v19 = vld [vmem:[%s1236_s2 + $0x18] sm:$0xff]  ;;  %v923_v20 = vld [vmem:[%s1235_s0 + $0x28] sm:$0xff] }
   0x8   :  { %v928_v21 = vld [vmem:[%s1236_s2 + $0x10] sm:$0xff]  ;;  %v927_v22 = vld [vmem:[%s1236_s2 + $0x8] sm:$0xff]  ;;  %v926_v23 = vld [vmem:[%s1236_s2] sm:$0xff] }
   0x9   :  { %v941_v42 = vld [vmem:[%s1238_s4 + $0x38] sm:$0xff]  ;;  %v940_v43 = vld [vmem:[%s1238_s4 + $0x30] sm:$0xff]  ;;  %v939_v45 = vld [vmem:[%s1238_s4 + $0x28] sm:$0xff] }
   0xa   :  { %198 = vmatpush.bf16.msra.mxu0 %v915_v2  ;;  %991 = vmatpush.bf16.msra.mxu3 %v915_v2  ;;  %v938_v46 = vld [vmem:[%s1238_s4 + $0x20] sm:$0xff]  ;;  %v937_v52 = vld [vmem:[%s1238_s4 + $0x18] sm:$0xff]  ;;  %v936_v53 = vld [vmem:[%s1238_s4 + $0x10] sm:$0xff] }
   0xb   :  { %373 = vmatpush.bf16.msra.mxu1 %v932_v15  ;;  %513 = vmatpush.bf16.msra.mxu2 %v941_v42  ;;  %v935_v54 = vld [vmem:[%s1238_s4 + $0x8] sm:$0xff]  ;;  %v934_v55 = vld [vmem:[%s1238_s4] sm:$0xff] }
   0xc   :  { %v1013_v57 = vld [vmem:[%s1237_s3] ss:$0 sm:$0xff] }
   0xe   :  { %199 = vmatpush.bf16.msra.mxu0 %v914_v3  ;;  %992 = vmatpush.bf16.msra.mxu3 %v914_v3 }
   0xf   :  { %374 = vmatpush.bf16.msra.mxu1 %v931_v16  ;;  %514 = vmatpush.bf16.msra.mxu2 %v940_v43 }
  0x12   :  { %200 = vmatpush.bf16.msra.mxu0 %v913_v4  ;;  %993 = vmatpush.bf16.msra.mxu3 %v913_v4 }
  0x13   :  { %375 = vmatpush.bf16.msra.mxu1 %v930_v17  ;;  %515 = vmatpush.bf16.msra.mxu2 %v939_v45 }
  0x16   :  { %201 = vmatpush.bf16.msra.mxu0 %v912_v5  ;;  %994 = vmatpush.bf16.msra.mxu3 %v912_v5 }
  0x17   :  { %376 = vmatpush.bf16.msra.mxu1 %v929_v19  ;;  %516 = vmatpush.bf16.msra.mxu2 %v938_v46 }
  0x1a   :  { %202 = vmatpush.bf16.msra.mxu0 %v911_v6  ;;  %995 = vmatpush.bf16.msra.mxu3 %v911_v6 }
  0x1b   :  { %377 = vmatpush.bf16.msra.mxu1 %v928_v21  ;;  %517 = vmatpush.bf16.msra.mxu2 %v937_v52 }
  0x1e   :  { %203 = vmatpush.bf16.msra.mxu0 %v910_v7  ;;  %996 = vmatpush.bf16.msra.mxu3 %v910_v7 }
  0x1f   :  { %378 = vmatpush.bf16.msra.mxu1 %v927_v22  ;;  %518 = vmatpush.bf16.msra.mxu2 %v936_v53 }
  0x21   :  { %204 = vmatmul.bf16.vlgmr.msra.gmra.mxu0 %v918_v8  ;;  %234 = vmatmul.bf16.vlgmr.msra.gmra.mxu3 %v924_v9 }
  0x22   :  { %997 = vmatpush.bf16.msrb.mxu3 %v933_v14 }
  0x23   :  { %379 = vmatpush.bf16.msra.mxu1 %v926_v23  ;;  %519 = vmatpush.bf16.msra.mxu2 %v935_v54 }
  0x26   :  { %998 = vmatpush.bf16.msrb.mxu3 %v932_v15 }
  0x27   :  { %520 = vmatpush.bf16.msra.mxu2 %v934_v55 }
  0x2a   :  { %999 = vmatpush.bf16.msrb.mxu3 %v931_v16 }
  0x2e   :  { %1000 = vmatpush.bf16.msrb.mxu3 %v930_v17 }
  0x31   :  { %209 = vmatmul.bf16.gmra.mxu0 %v919_v10  ;;  %239 = vmatmul.bf16.gmra.mxu3 %v925_v11 }
  0x32   :  { %1001 = vmatpush.bf16.msrb.mxu3 %v929_v19 }
  0x36   :  { %1002 = vmatpush.bf16.msrb.mxu3 %v928_v21 }
  0x3a   :  { %1003 = vmatpush.bf16.msrb.mxu3 %v927_v22 }
  0x3e   :  { %1004 = vmatpush.bf16.msrb.mxu3 %v926_v23 }
  0x41   :  { %214 = vmatmul.bf16.gmra.mxu0 %v920_v12 }
  0x42   :  { %1005 = vmatpush.bf16.msra.mxu3 %v941_v42 }
  0x46   :  { %1006 = vmatpush.bf16.msra.mxu3 %v940_v43 }
  0x4a   :  { %1007 = vmatpush.bf16.msra.mxu3 %v939_v45 }
  0x4e   :  { %1008 = vmatpush.bf16.msra.mxu3 %v938_v46 }
  0x51   :  { %219 = vmatmul.bf16.gmra.mxu0 %v921_v13 }
  0x52   :  { %1009 = vmatpush.bf16.msra.mxu3 %v937_v52 }
  0x56   :  { %1010 = vmatpush.bf16.msra.mxu3 %v936_v53 }
  0x5a   :  { %1011 = vmatpush.bf16.msra.mxu3 %v935_v54 }
  0x5e   :  { %1012 = vmatpush.bf16.msra.mxu3 %v934_v55 }
  0x61   :  { %224 = vmatmul.bf16.gmra.mxu0 %v922_v18 }
  0x71   :  { %229 = vmatmul.bf16.gmra.mxu0 %v923_v20 }
  0x9e   :  { %v205_v24 = vpop.f32.mrf.mxu0 }
  0xa4   :  { %v235_v27 = vpop.f32.mrf.mxu3 }
  0xa6   :  { %v207_v25 = vpop.f32.mrf.mxu0 }
  0xa7   :  { %v296_v26 = vpack.c.bf16 %v207_v25, %v205_v24 }
  0xa9   :  { %380 = vmatmul.bf16.vlgmr.msra.gmra.mxu1 %v296_v26 }
  0xac   :  { %v237_v29 = vpop.f32.mrf.mxu3 }
  0xad   :  { %v302_v30 = vpack.c.bf16 %v237_v29, %v235_v27 }
  0xae   :  { %v210_v28 = vpop.f32.mrf.mxu0 }
  0xaf   :  { %410 = vmatmul.bf16.vlgmr.msrb.gmra.mxu3 %v302_v30 }
  0xb4   :  { %v240_v33 = vpop.f32.mrf.mxu3 }
  0xb6   :  { %v212_v31 = vpop.f32.mrf.mxu0 }
  0xb7   :  { %v297_v32 = vpack.c.bf16 %v212_v31, %v210_v28 }
  0xb9   :  { %385 = vmatmul.bf16.gmra.mxu1 %v297_v32 }
  0xbc   :  { %v242_v35 = vpop.f32.mrf.mxu3 }
  0xbd   :  { %v303_v36 = vpack.c.bf16 %v242_v35, %v240_v33 }
  0xbe   :  { %v215_v34 = vpop.f32.mrf.mxu0 }
  0xbf   :  { %415 = vmatmul.bf16.gmra.mxu3 %v303_v36 }
  0xc6   :  { %v217_v37 = vpop.f32.mrf.mxu0 }
  0xc7   :  { %v298_v38 = vpack.c.bf16 %v217_v37, %v215_v34 }
  0xc9   :  { %390 = vmatmul.bf16.gmra.mxu1 %v298_v38 }
  0xce   :  { %v220_v39 = vpop.f32.mrf.mxu0 }
  0xd6   :  { %v222_v40 = vpop.f32.mrf.mxu0 }
  0xd7   :  { %v299_v41 = vpack.c.bf16 %v222_v40, %v220_v39 }
  0xd9   :  { %395 = vmatmul.bf16.gmra.mxu1 %v299_v41 }
  0xde   :  { %v225_v44 = vpop.f32.mrf.mxu0 }
  0xe6   :  { %v227_v47 = vpop.f32.mrf.mxu0 }
  0xe7   :  { %v300_v48 = vpack.c.bf16 %v227_v47, %v225_v44 }
  0xe9   :  { %400 = vmatmul.bf16.gmra.mxu1 %v300_v48 }
  0xee   :  { %v230_v49 = vpop.f32.mrf.mxu0 }
  0xf6   :  { %v232_v50 = vpop.f32.mrf.mxu0 }
  0xf7   :  { %v301_v51 = vpack.c.bf16 %v232_v50, %v230_v49  ;;  %v1162_v50 = vld [vmem:[%s1239_s5] ss:$0 sm:$0xff] }
  0xf9   :  { %405 = vmatmul.bf16.gmra.mxu1 %v301_v51 }
 0x126   :  { %v381_v56 = vpop.f32.mrf.mxu1 }
 0x127   :  { %v382_v58 = vadd.f32 %v1013_v57, %v381_v56 }
 0x129   :  { %v421_v61 = vmax.f32 %v382_v58, 0.0 }
 0x12e   :  { %v383_v59 = vpop.f32.mrf.mxu1 }
 0x12f   :  { %v384_v60 = vadd.f32 %v1013_v57, %v383_v59 }
 0x131   :  { %v422_v62 = vmax.f32 %v384_v60, 0.0 }
 0x132   :  { %v411_v1 = vpop.f32.mrf.mxu3 }
 0x133   :  { %v437_v63 = vpack.c.bf16 %v422_v62, %v421_v61  ;;  %v412_v2 = vadd.f32 %v1013_v57, %v411_v1 }
 0x135   :  { %521 = vmatmul.bf16.vlgmr.msra.gmra.mxu2 %v437_v63  ;;  %v433_v7 = vmax.f32 %v412_v2, 0.0 }
 0x136   :  { %v386_v0 = vpop.f32.mrf.mxu1 }
 0x137   :  { %v387_v3 = vadd.f32 %v1013_v57, %v386_v0 }
 0x139   :  { %v423_v9 = vmax.f32 %v387_v3, 0.0 }
 0x13a   :  { %v413_v5 = vpop.f32.mrf.mxu3 }
 0x13b   :  { %v414_v8 = vadd.f32 %v1013_v57, %v413_v5 }
 0x13d   :  { %v434_v11 = vmax.f32 %v414_v8, 0.0 }
 0x13e   :  { %v388_v4 = vpop.f32.mrf.mxu1 }
 0x13f   :  { %v389_v6 = vadd.f32 %v1013_v57, %v388_v4  ;;  %v443_v13 = vpack.c.bf16 %v434_v11, %v433_v7 }
 0x141   :  { %v424_v10 = vmax.f32 %v389_v6, 0.0  ;;  %551 = vmatmul.bf16.vlgmr.msra.gmra.mxu3 %v443_v13 }
 0x142   :  { %v416_v15 = vpop.f32.mrf.mxu3 }
 0x143   :  { %v438_v12 = vpack.c.bf16 %v424_v10, %v423_v9  ;;  %v417_v16 = vadd.f32 %v1013_v57, %v416_v15 }
 0x145   :  { %526 = vmatmul.bf16.gmra.mxu2 %v438_v12  ;;  %v435_v21 = vmax.f32 %v417_v16, 0.0 }
 0x146   :  { %v391_v14 = vpop.f32.mrf.mxu1 }
 0x147   :  { %v392_v17 = vadd.f32 %v1013_v57, %v391_v14 }
 0x149   :  { %v425_v23 = vmax.f32 %v392_v17, 0.0 }
 0x14a   :  { %v418_v19 = vpop.f32.mrf.mxu3 }
 0x14b   :  { %v419_v22 = vadd.f32 %v1013_v57, %v418_v19 }
 0x14d   :  { %v436_v25 = vmax.f32 %v419_v22, 0.0 }
 0x14e   :  { %v393_v18 = vpop.f32.mrf.mxu1 }
 0x14f   :  { %v394_v20 = vadd.f32 %v1013_v57, %v393_v18  ;;  %v444_v27 = vpack.c.bf16 %v436_v25, %v435_v21 }
 0x151   :  { %v426_v24 = vmax.f32 %v394_v20, 0.0  ;;  %556 = vmatmul.bf16.gmra.mxu3 %v444_v27 }
 0x153   :  { %v439_v26 = vpack.c.bf16 %v426_v24, %v425_v23 }
 0x155   :  { %531 = vmatmul.bf16.gmra.mxu2 %v439_v26 }
 0x156   :  { %v396_v28 = vpop.f32.mrf.mxu1 }
 0x157   :  { %v397_v29 = vadd.f32 %v1013_v57, %v396_v28 }
 0x159   :  { %v427_v32 = vmax.f32 %v397_v29, 0.0 }
 0x15e   :  { %v398_v30 = vpop.f32.mrf.mxu1 }
 0x15f   :  { %v399_v31 = vadd.f32 %v1013_v57, %v398_v30 }
 0x161   :  { %v428_v33 = vmax.f32 %v399_v31, 0.0 }
 0x163   :  { %v440_v34 = vpack.c.bf16 %v428_v33, %v427_v32 }
 0x165   :  { %536 = vmatmul.bf16.gmra.mxu2 %v440_v34 }
 0x166   :  { %v401_v35 = vpop.f32.mrf.mxu1 }
 0x167   :  { %v402_v36 = vadd.f32 %v1013_v57, %v401_v35 }
 0x169   :  { %v429_v39 = vmax.f32 %v402_v36, 0.0 }
 0x16e   :  { %v403_v37 = vpop.f32.mrf.mxu1 }
 0x16f   :  { %v404_v38 = vadd.f32 %v1013_v57, %v403_v37 }
 0x171   :  { %v430_v40 = vmax.f32 %v404_v38, 0.0 }
 0x173   :  { %v441_v41 = vpack.c.bf16 %v430_v40, %v429_v39 }
 0x175   :  { %541 = vmatmul.bf16.gmra.mxu2 %v441_v41 }
 0x176   :  { %v406_v42 = vpop.f32.mrf.mxu1 }
 0x177   :  { %v407_v43 = vadd.f32 %v1013_v57, %v406_v42 }
 0x179   :  { %v431_v46 = vmax.f32 %v407_v43, 0.0 }
 0x17e   :  { %v408_v44 = vpop.f32.mrf.mxu1 }
 0x17f   :  { %v409_v45 = vadd.f32 %v1013_v57, %v408_v44 }
 0x181   :  { %v432_v47 = vmax.f32 %v409_v45, 0.0 }
 0x183   :  { %v442_v48 = vpack.c.bf16 %v432_v47, %v431_v46 }
 0x185   :  { %546 = vmatmul.bf16.gmra.mxu2 %v442_v48 }
 0x1b8   :  { %v522_v49 = vpop.f32.mrf.mxu2 }
 0x1b9   :  { %v523_v51 = vadd.f32 %v1162_v50, %v522_v49 }
 0x1bb   :  { %v562_v54 = vmax.f32 %v523_v51, 0.0 }
 0x1bd   :  { %v698_v44 = vmul.f32 %v562_v54, %v562_v54 }
 0x1c0   :  { %v524_v52 = vpop.f32.mrf.mxu2 }
 0x1c1   :  { %v525_v53 = vadd.f32 %v1162_v50, %v524_v52 }
 0x1c3   :  { %v563_v55 = vmax.f32 %v525_v53, 0.0 }
 0x1c4   :  { %v552_v58 = vpop.f32.mrf.mxu3 }
 0x1c5   :  { %v945_v56 = vpack.c.bf16 %v563_v55, %v562_v54  ;;  %v553_v0 = vadd.f32 %v1162_v50, %v552_v58  ;;  %v699_v40 = vmul.f32 %v563_v55, %v563_v55  ;;  %v676_v45 = vadd.f32 %v563_v55, %v562_v54 }
 0x1c7   :  { %946 = vst [vmem:[%s1240_s6] sm:$0xff] %v945_v56   ;;  %v574_v3 = vmax.f32 %v553_v0, 0.0  ;;  %v714_v48 = vadd.f32 %v699_v40, %v698_v44 }
 0x1c8   :  { %v527_v57 = vpop.f32.mrf.mxu2 }
 0x1c9   :  { %v528_v59 = vadd.f32 %v1162_v50, %v527_v57  ;;  %v1173_v7 = vmul.f32 0.0, %v574_v3 }
 0x1cb   :  { %v564_v62 = vmax.f32 %v528_v59, 0.0 }
 0x1cc   :  { %v554_v61 = vpop.f32.mrf.mxu3 }
 0x1cd   :  { %v555_v1 = vadd.f32 %v1162_v50, %v554_v61  ;;  %v662_v5 = vmul.f32 0.0, %v564_v62 }
 0x1cf   :  { %v575_v4 = vmax.f32 %v555_v1, 0.0  ;;  %v700_v46 = vmul.f32 %v662_v5, %v662_v5  ;;  %v677_v49 = vadd.f32 %v676_v45, %v662_v5 }
 0x1d0   :  { %v529_v60 = vpop.f32.mrf.mxu2 }
 0x1d1   :  { %v530_v63 = vadd.f32 %v1162_v50, %v529_v60  ;;  %v1175_v8 = vmul.f32 0.0, %v575_v4  ;;  %v715_v56 = vadd.f32 %v714_v48, %v700_v46 }
 0x1d3   :  { %v565_v2 = vmax.f32 %v530_v63, 0.0  ;;  %v975_v11 = vpack.c.bf16 %v1175_v8, %v1173_v7 }
 0x1d4   :  { %v557_v12 = vpop.f32.mrf.mxu3 }
 0x1d5   :  { %v663_v6 = vmul.f32 0.0, %v565_v2  ;;  %987 = vst [vmem:[%s1240_s6 + $0x30] sm:$0xff] %v975_v11   ;;  %v558_v18 = vadd.f32 %v1162_v50, %v557_v12 }
 0x1d7   :  { %v950_v9 = vpack.c.bf16 %v663_v6, %v662_v5  ;;  %v576_v21 = vmax.f32 %v558_v18, 0.0  ;;  %v701_v51 = vmul.f32 %v663_v6, %v663_v6  ;;  %v678_v57 = vadd.f32 %v677_v49, %v663_v6 }
 0x1d8   :  { %v532_v10 = vpop.f32.mrf.mxu2 }
 0x1d9   :  { %982 = vst [vmem:[%s1240_s6 + $0x8] sm:$0xff] %v950_v9   ;;  %v533_v13 = vadd.f32 %v1162_v50, %v532_v10  ;;  %v1189_v25 = vmul.f32 0.0, %v576_v21  ;;  %v716_v61 = vadd.f32 %v715_v56, %v701_v51 }
 0x1db   :  { %v566_v16 = vmax.f32 %v533_v13, 0.0 }
 0x1dc   :  { %v559_v15 = vpop.f32.mrf.mxu3 }
 0x1dd   :  { %v560_v19 = vadd.f32 %v1162_v50, %v559_v15  ;;  %v664_v23 = vmul.f32 0.0, %v566_v16 }
 0x1df   :  { %v577_v22 = vmax.f32 %v560_v19, 0.0  ;;  %v702_v58 = vmul.f32 %v664_v23, %v664_v23  ;;  %v679_v62 = vadd.f32 %v678_v57, %v664_v23 }
 0x1e0   :  { %v534_v14 = vpop.f32.mrf.mxu2 }
 0x1e1   :  { %v535_v17 = vadd.f32 %v1162_v50, %v534_v14  ;;  %v1191_v26 = vmul.f32 0.0, %v577_v22  ;;  %v717_v55 = vadd.f32 %v716_v61, %v702_v58 }
 0x1e3   :  { %v567_v20 = vmax.f32 %v535_v17, 0.0  ;;  %v980_v29 = vpack.c.bf16 %v1191_v26, %v1189_v25 }
 0x1e5   :  { %v665_v24 = vmul.f32 0.0, %v567_v20  ;;  %988 = vst [vmem:[%s1240_s6 + $0x38] sm:$0xff] %v980_v29  }
 0x1e7   :  { %v955_v27 = vpack.c.bf16 %v665_v24, %v664_v23  ;;  %v703_v63 = vmul.f32 %v665_v24, %v665_v24  ;;  %v680_v0 = vadd.f32 %v679_v62, %v665_v24 }
 0x1e8   :  { %v537_v28 = vpop.f32.mrf.mxu2 }
 0x1e9   :  { %983 = vst [vmem:[%s1240_s6 + $0x10] sm:$0xff] %v955_v27   ;;  %v538_v30 = vadd.f32 %v1162_v50, %v537_v28  ;;  %v718_v3 = vadd.f32 %v717_v55, %v703_v63 }
 0x1eb   :  { %v568_v32 = vmax.f32 %v538_v30, 0.0  ;;  %v710_v30 = vmul.f32 %v1173_v7, %v1173_v7 }
 0x1ed   :  { %v666_v35 = vmul.f32 0.0, %v568_v32 }
 0x1ef   :  { %v704_v1 = vmul.f32 %v666_v35, %v666_v35  ;;  %v681_v4 = vadd.f32 %v680_v0, %v666_v35 }
 0x1f0   :  { %v539_v31 = vpop.f32.mrf.mxu2 }
 0x1f1   :  { %v540_v33 = vadd.f32 %v1162_v50, %v539_v31  ;;  %v719_v6 = vadd.f32 %v718_v3, %v704_v1 }
 0x1f3   :  { %v569_v34 = vmax.f32 %v540_v33, 0.0 }
 0x1f5   :  { %v667_v36 = vmul.f32 0.0, %v569_v34 }
 0x1f7   :  { %v960_v37 = vpack.c.bf16 %v667_v36, %v666_v35  ;;  %v705_v5 = vmul.f32 %v667_v36, %v667_v36  ;;  %v682_v9 = vadd.f32 %v681_v4, %v667_v36  ;;  %v712_v35 = vmul.f32 %v1189_v25, %v1189_v25 }
 0x1f8   :  { %v542_v38 = vpop.f32.mrf.mxu2 }
 0x1f9   :  { %984 = vst [vmem:[%s1240_s6 + $0x18] sm:$0xff] %v960_v37   ;;  %v543_v39 = vadd.f32 %v1162_v50, %v542_v38  ;;  %v720_v13 = vadd.f32 %v719_v6, %v705_v5 }
 0x1fb   :  { %v570_v42 = vmax.f32 %v543_v39, 0.0 }
 0x1fd   :  { %v668_v52 = vmul.f32 0.0, %v570_v42 }
 0x1ff   :  { %v706_v10 = vmul.f32 %v668_v52, %v668_v52  ;;  %v683_v14 = vadd.f32 %v682_v9, %v668_v52 }
 0x200   :  { %v544_v41 = vpop.f32.mrf.mxu2 }
 0x201   :  { %v545_v43 = vadd.f32 %v1162_v50, %v544_v41  ;;  %v721_v17 = vadd.f32 %v720_v13, %v706_v10 }
 0x203   :  { %v571_v47 = vmax.f32 %v545_v43, 0.0 }
 0x205   :  { %v669_v53 = vmul.f32 0.0, %v571_v47 }
 0x207   :  { %v965_v59 = vpack.c.bf16 %v669_v53, %v668_v52  ;;  %v707_v15 = vmul.f32 %v669_v53, %v669_v53  ;;  %v684_v18 = vadd.f32 %v683_v14, %v669_v53 }
 0x208   :  { %v547_v60 = vpop.f32.mrf.mxu2 }
 0x209   :  { %985 = vst [vmem:[%s1240_s6 + $0x20] sm:$0xff] %v965_v59   ;;  %v548_v54 = vadd.f32 %v1162_v50, %v547_v60  ;;  %v722_v21 = vadd.f32 %v721_v17, %v707_v15 }
 0x20b   :  { %v572_v2 = vmax.f32 %v548_v54, 0.0 }
 0x20d   :  { %v670_v11 = vmul.f32 0.0, %v572_v2 }
 0x20f   :  { %v708_v19 = vmul.f32 %v670_v11, %v670_v11  ;;  %v685_v22 = vadd.f32 %v684_v18, %v670_v11 }
 0x210   :  { %v549_v12 = vpop.f32.mrf.mxu2 }
 0x211   :  { %v550_v16 = vadd.f32 %v1162_v50, %v549_v12  ;;  %v723_v24 = vadd.f32 %v722_v21, %v708_v19  ;;  %v711_v50 = vmul.f32 %v1175_v8, %v1175_v8 }
 0x213   :  { %v573_v20 = vmax.f32 %v550_v16, 0.0 }
 0x215   :  { %v671_v23 = vmul.f32 0.0, %v573_v20 }
 0x217   :  { %v686_v27 = vadd.f32 %v685_v22, %v671_v23  ;;  %v709_v28 = vmul.f32 %v671_v23, %v671_v23  ;;  %v970_v29 = vpack.c.bf16 %v671_v23, %v670_v11 }
 0x219   :  { %v687_v31 = vadd.f32 %v686_v27, %v1173_v7  ;;  %v724_v32 = vadd.f32 %v723_v24, %v709_v28  ;;  %986 = vst [vmem:[%s1240_s6 + $0x28] sm:$0xff] %v970_v29   ;;  %v713_v7 = vmul.f32 %v1191_v26, %v1191_v26 }
 0x21b   :  { %v688_v33 = vadd.f32 %v687_v31, %v1175_v8  ;;  %v725_v34 = vadd.f32 %v724_v32, %v710_v30 }
 0x21d   :  { %v689_v36 = vadd.f32 %v688_v33, %v1189_v25  ;;  %v726_v37 = vadd.f32 %v725_v34, %v711_v50 }
 0x21f   :  { %v690_v38 = vadd.f32 %v689_v36, %v1191_v26  ;;  %v727_v39 = vadd.f32 %v726_v37, %v712_v35 }
 0x221   :  { %v691_v40 = vrot.slane %v690_v38, 4  ;;  %v728_v41 = vadd.f32 %v727_v39, %v713_v7 }
 0x223   :  { %v692_v42 = vadd.f32 %v691_v40, %v690_v38  ;;  %v729_v43 = vrot.slane %v728_v41, 4 }
 0x225   :  { %v693_v44 = vrot.slane %v692_v42, 2  ;;  %v730_v45 = vadd.f32 %v729_v43, %v728_v41 }
 0x227   :  { %v694_v8 = vadd.f32 %v693_v44, %v692_v42  ;;  %v731_v46 = vrot.slane %v730_v45, 2 }
 0x229   :  { %v695_v47 = vrot.slane %v694_v8, 1  ;;  %v732_v48 = vadd.f32 %v731_v46, %v730_v45 }
 0x22b   :  { %v696_v49 = vadd.f32 %v695_v47, %v694_v8  ;;  %v733_v51 = vrot.slane %v732_v48, 1 }
 0x22d   :  { %697 = vst [vmem:[%s1241_s7] sm:$0x1] %v696_v49  ;;  %v734_v25 = vadd.f32 %v733_v51, %v732_v48 }
 0x22f   :  { %735 = vst [vmem:[%s1242_s8] sm:$0x1] %v734_v25 }

</bundles_post_ra>
